<compile_context>
chip_gen: v7x
topology: tpu7x:2x2x1
jax: 0.10.0
libtpu: 0.0.40
codegen_flags: <defaults>
</compile_context>

<pallas_src>
import jax
import jax.numpy as jnp
from jax.experimental import pallas as pl
from jax.experimental.pallas import tpu as pltpu


def _cdiv(a, b):
    return (a + b - 1) // b


def _round_up(a, b):
    return _cdiv(a, b) * b


def similarity_kernel(head_ref, low_ref, high_ref,
                      wh_w_ref, wh_b_ref, wp_w_ref, wp_b_ref, out_ref):
    # head/low/high: (TILE_B, 2*mem_dim) bf16   (halved input DMA)
    # wh_w : (14*mem_dim, hidden) bf16          resident across grid steps
    # wh_b : (1, hidden)          f32
    # wp_w : (hidden, 2)          bf16
    # wp_b : (1, 2)               f32
    # out  : (TILE_B, 2)          f32
    head = head_ref[...].astype(jnp.float32)   # f32 VPU math (v5e-safe)
    low = low_ref[...].astype(jnp.float32)
    high = high_ref[...].astype(jnp.float32)

    # "Summary related features" -> single lane-axis concat so the wh
    # contraction is ONE fused K = 14*mem_dim MXU dot (<=256, one K-pass on
    # v6e/v7x; two on v5e) instead of 7 separate K=2*mem_dim dots.
    feat = jnp.concatenate(
        (jnp.abs(low - head),    # low_head_diff
         jnp.abs(high - head),   # high_head_diff
         low * head,             # low_head_angle
         high * head,            # high_head_angle
         low, high, head),
        axis=-1).astype(jnp.bfloat16)                       # (TILE_B, 14*mem_dim)

    # wh: Linear(14*mem_dim -> hidden), bf16 inputs, f32 accumulation.
    h = jax.nn.sigmoid(
        jnp.dot(feat, wh_w_ref[...], preferred_element_type=jnp.float32)
        + wh_b_ref[...])                                    # (TILE_B, hidden) f32

    # wp: Linear(hidden -> 2).  Output block last dim == full array dim (2),
    # so HBM writeback is 2 lanes/row instead of a 128-lane padded slab.
    out_ref[...] = (
        jnp.dot(h.astype(jnp.bfloat16), wp_w_ref[...],
                preferred_element_type=jnp.float32)
        + wp_b_ref[...])


def _pick_tile(b_pad, tile_b):
    """Pick an effective batch tile: multiple of 8, <= b_pad, and yielding
    >=2 parallel grid steps when there is enough work (v7x has 2 TCs)."""
    t = min(_round_up(tile_b, 8), b_pad)
    if b_pad >= 16 and _cdiv(b_pad, t) < 2:
        t = _round_up(_cdiv(b_pad, 2), 8)
    return max(t, 8)


def similarity_forward(head, low, high, wh_w, wh_b, wp_w, wp_b, mem_dim,
                       tile_b=512):
    """Batched Similarity forward.

    head/low/high: anything reshapeable to (B, 2*mem_dim) (B may be 1,
    matching the unbatched PyTorch module).  wh_w is (14*mem_dim, hidden)
    (PyTorch weight transposed), wh_b (1, hidden), wp_w (hidden, 2),
    wp_b (1, 2).  Returns (B, 2) float32.

    tile_b is the primary tuning knob; 512-2048 keeps the double-buffered
    working set well under every generation's scoped-VMEM default.
    """
    d2 = 2 * mem_dim
    hidden = wh_w.shape[1]

    # bf16 staging halves the per-tile input DMA; matmul operands are bf16
    # anyway so dot precision is unchanged.
    head = jnp.reshape(head, (-1, d2)).astype(jnp.bfloat16)
    low = jnp.reshape(low, (-1, d2)).astype(jnp.bfloat16)
    high = jnp.reshape(high, (-1, d2)).astype(jnp.bfloat16)
    b = head.shape[0]

    # Only pad to a sublane multiple (<= 7 extra rows); the ragged tail of the
    # tile grid is handled by partial blocks (masked output stores).
    b_pad = _round_up(b, 8)
    if b_pad != b:
        pad = ((0, b_pad - b), (0, 0))
        head = jnp.pad(head, pad)
        low = jnp.pad(low, pad)
        high = jnp.pad(high, pad)

    t = _pick_tile(b_pad, tile_b)
    grid = (_cdiv(b_pad, t),)

    # Weight glue (layout only): single fused bf16 wh weight, f32 biases.
    wh_w_bf = wh_w.astype(jnp.bfloat16)                       # (14*mem_dim, hidden)
    wh_b_r = jnp.reshape(wh_b, (1, hidden)).astype(jnp.float32)
    wp_w_bf = wp_w.astype(jnp.bfloat16)                       # (hidden, 2)
    wp_b_r = jnp.reshape(wp_b, (1, 2)).astype(jnp.float32)

    out = pl.pallas_call(
        similarity_kernel,
        out_shape=jax.ShapeDtypeStruct((b_pad, 2), jnp.float32),
        grid_spec=pltpu.PrefetchScalarGridSpec(
            num_scalar_prefetch=0,
            grid=grid,
            in_specs=[
                pl.BlockSpec((t, d2), lambda i: (i, 0)),      # head
                pl.BlockSpec((t, d2), lambda i: (i, 0)),      # low
                pl.BlockSpec((t, d2), lambda i: (i, 0)),      # high
                # Weights/biases: same block every step -> stay resident.
                pl.BlockSpec((7 * d2, hidden), lambda i: (0, 0)),
                pl.BlockSpec((1, hidden), lambda i: (0, 0)),
                pl.BlockSpec((hidden, 2), lambda i: (0, 0)),
                pl.BlockSpec((1, 2), lambda i: (0, 0)),
            ],
            out_specs=pl.BlockSpec((t, 2), lambda i: (i, 0)),
        ),
        compiler_params=pltpu.CompilerParams(
            dimension_semantics=("parallel",)),
    )(head, low, high, wh_w_bf, wh_b_r, wp_w_bf, wp_b_r)

    return out[:b]


def _init_params(key, mem_dim, hidden_dim):
    """Deterministic synthetic parameters (shapes per nn.Linear in __init__)."""
    k1, k2, k3, k4 = jax.random.split(key, 4)
    in_wh = 14 * mem_dim
    # stored transposed vs. PyTorch's (out, in) convention -> (in, out)
    wh_w = jax.random.normal(k1, (in_wh, hidden_dim), jnp.float32) * 0.05
    wh_b = jax.random.normal(k2, (1, hidden_dim), jnp.float32) * 0.05
    wp_w = jax.random.normal(k3, (hidden_dim, 2), jnp.float32) * 0.05
    wp_b = jax.random.normal(k4, (1, 2), jnp.float32) * 0.05
    return wh_w, wh_b, wp_w, wp_b


def _reference(head, low, high, wh_w, wh_b, wp_w, wp_b, mem_dim):
    """Pure-JAX f32 reference mirroring the PyTorch forward (batched rows)."""
    d2 = 2 * mem_dim
    head = jnp.reshape(head, (-1, d2))
    low = jnp.reshape(low, (-1, d2))
    high = jnp.reshape(high, (-1, d2))
    feat = jnp.concatenate(
        (jnp.abs(low - head), jnp.abs(high - head), low * head, high * head,
         low, high, head), axis=-1)                       # (B, 14*mem_dim)
    h = jax.nn.sigmoid(feat @ wh_w + jnp.reshape(wh_b, (1, -1)))
    return h @ wp_w + jnp.reshape(wp_b, (1, 2))           # (B, 2)


if __name__ == "__main__":
    mem_dim = 16
    hidden_dim = 32
    batch = 200   # deliberately not a multiple of the batch tile

    key = jax.random.PRNGKey(0)
    k_h, k_l, k_hi, k_p = jax.random.split(key, 4)
    # Each example: (2, mem_dim) — e.g. fwd/bwd states of a biLSTM — which the
    # forward views into a 2*mem_dim feature vector.
    head = jax.random.normal(k_h, (batch, 2, mem_dim), jnp.float32)
    low = jax.random.normal(k_l, (batch, 2, mem_dim), jnp.float32)
    high = jax.random.normal(k_hi, (batch, 2, mem_dim), jnp.float32)

    wh_w, wh_b, wp_w, wp_b = _init_params(k_p, mem_dim, hidden_dim)

    # Batched path (the point of the kernel).
    out = similarity_forward(head, low, high, wh_w, wh_b, wp_w, wp_b, mem_dim)
    out = jax.block_until_ready(out)
    ref = _reference(head, low, high, wh_w, wh_b, wp_w, wp_b, mem_dim)
    assert out.shape == (batch, 2)
    err = float(jnp.max(jnp.abs(out - ref)))
    assert err < 3e-2, f"batched max abs err {err}"   # bf16 staging + matmul tol

    # Single-example path, exactly like the original PyTorch forward signature.
    out1 = similarity_forward(head[0], low[0], high[0],
                              wh_w, wh_b, wp_w, wp_b, mem_dim)
    out1 = jax.block_until_ready(out1)
    ref1 = _reference(head[0], low[0], high[0], wh_w, wh_b, wp_w, wp_b, mem_dim)
    assert out1.shape == (1, 2)
    err1 = float(jnp.max(jnp.abs(out1 - ref1)))
    assert err1 < 3e-2, f"single max abs err {err1}"

    print("KERNEL_OK")
</pallas_src>

<mosaic_0001>
module attributes {stable_mosaic.version = 11 : i64} {
  func.func @similarity_kernel(%arg0: i32, %arg1: memref<104x32xbf16, #tpu.memory_space<vmem>>, %arg2: memref<104x32xbf16, #tpu.memory_space<vmem>>, %arg3: memref<104x32xbf16, #tpu.memory_space<vmem>>, %arg4: memref<224x32xbf16, #tpu.memory_space<vmem>>, %arg5: memref<1x32xf32, #tpu.memory_space<vmem>>, %arg6: memref<32x2xbf16, #tpu.memory_space<vmem>>, %arg7: memref<1x2xf32, #tpu.memory_space<vmem>>, %arg8: memref<104x2xf32, #tpu.memory_space<vmem>>) attributes {dimension_semantics = [#tpu.dimension_semantics<parallel>], iteration_bounds = array<i64: 2>, scalar_prefetch = 0 : i64, scratch_operands = 0 : i64, tpu.core_type = #tpu.core_type<tc>, window_params = [{transform_indices = @transform_0, window_bounds = array<i64: 104, 32>}, {transform_indices = @transform_1, window_bounds = array<i64: 104, 32>}, {transform_indices = @transform_2, window_bounds = array<i64: 104, 32>}, {pipeline_mode = #tpu.pipeline_mode<synchronous>, transform_indices = @transform_3, window_bounds = array<i64: 224, 32>}, {pipeline_mode = #tpu.pipeline_mode<synchronous>, transform_indices = @transform_4, window_bounds = array<i64: 1, 32>}, {pipeline_mode = #tpu.pipeline_mode<synchronous>, transform_indices = @transform_5, window_bounds = array<i64: 32, 2>}, {pipeline_mode = #tpu.pipeline_mode<synchronous>, transform_indices = @transform_6, window_bounds = array<i64: 1, 2>}, {transform_indices = @transform_7, window_bounds = array<i64: 104, 2>}]} {
    %c0 = arith.constant 0 : index
    %c0_0 = arith.constant 0 : index
    %0 = vector.load %arg1[%c0, %c0_0] : memref<104x32xbf16, #tpu.memory_space<vmem>>, vector<104x32xbf16>
    %1 = arith.extf %0 : vector<104x32xbf16> to vector<104x32xf32>
    %c0_1 = arith.constant 0 : index
    %c0_2 = arith.constant 0 : index
    %2 = vector.load %arg2[%c0_1, %c0_2] : memref<104x32xbf16, #tpu.memory_space<vmem>>, vector<104x32xbf16>
    %3 = arith.extf %2 : vector<104x32xbf16> to vector<104x32xf32>
    %c0_3 = arith.constant 0 : index
    %c0_4 = arith.constant 0 : index
    %4 = vector.load %arg3[%c0_3, %c0_4] : memref<104x32xbf16, #tpu.memory_space<vmem>>, vector<104x32xbf16>
    %5 = arith.extf %4 : vector<104x32xbf16> to vector<104x32xf32>
    %6 = arith.subf %3, %1 : vector<104x32xf32>
    %7 = math.absf %6 : vector<104x32xf32>
    %8 = arith.subf %5, %1 : vector<104x32xf32>
    %9 = math.absf %8 : vector<104x32xf32>
    %10 = arith.mulf %3, %1 : vector<104x32xf32>
    %11 = arith.mulf %5, %1 : vector<104x32xf32>
    %12 = tpu.concatenate %7, %9, %10, %11, %3, %5, %1 in 1 : vector<104x32xf32>, vector<104x32xf32>, vector<104x32xf32>, vector<104x32xf32>, vector<104x32xf32>, vector<104x32xf32>, vector<104x32xf32> -> vector<104x224xf32>
    %13 = arith.truncf %12 : vector<104x224xf32> to vector<104x224xbf16>
    %c0_5 = arith.constant 0 : index
    %c0_6 = arith.constant 0 : index
    %14 = vector.load %arg4[%c0_5, %c0_6] : memref<224x32xbf16, #tpu.memory_space<vmem>>, vector<224x32xbf16>
    %cst = arith.constant dense<0.000000e+00> : vector<104x32xf32>
    %15 = tpu.matmul %13, %14, %cst {dimension_numbers = #tpu.dot_dimension_numbers<[1], [0], [0], [1], [0, 0, 1, 1], [], []>} : vector<104x224xbf16>, vector<224x32xbf16>, vector<104x32xf32> -> vector<104x32xf32>
    %c0_7 = arith.constant 0 : index
    %c0_8 = arith.constant 0 : index
    %16 = vector.load %arg5[%c0_7, %c0_8] : memref<1x32xf32, #tpu.memory_space<vmem>>, vector<1x32xf32>
    %17 = vector.broadcast %16 : vector<1x32xf32> to vector<104x32xf32>
    %18 = arith.addf %15, %17 : vector<104x32xf32>
    %19 = arith.negf %18 : vector<104x32xf32>
    %20 = math.exp %19 : vector<104x32xf32>
    %cst_9 = arith.constant 1.000000e+00 : f32
    %21 = vector.broadcast %cst_9 : f32 to vector<104x32xf32>
    %22 = arith.addf %21, %20 : vector<104x32xf32>
    %23 = arith.divf %21, %22 : vector<104x32xf32>
    %24 = arith.truncf %23 : vector<104x32xf32> to vector<104x32xbf16>
    %c0_10 = arith.constant 0 : index
    %c0_11 = arith.constant 0 : index
    %25 = vector.load %arg6[%c0_10, %c0_11] : memref<32x2xbf16, #tpu.memory_space<vmem>>, vector<32x2xbf16>
    %cst_12 = arith.constant dense<0.000000e+00> : vector<104x2xf32>
    %26 = tpu.matmul %24, %25, %cst_12 {dimension_numbers = #tpu.dot_dimension_numbers<[1], [0], [0], [1], [0, 0, 1, 1], [], []>} : vector<104x32xbf16>, vector<32x2xbf16>, vector<104x2xf32> -> vector<104x2xf32>
    %c0_13 = arith.constant 0 : index
    %c0_14 = arith.constant 0 : index
    %27 = vector.load %arg7[%c0_13, %c0_14] : memref<1x2xf32, #tpu.memory_space<vmem>>, vector<1x2xf32>
    %28 = vector.broadcast %27 : vector<1x2xf32> to vector<104x2xf32>
    %29 = arith.addf %26, %28 : vector<104x2xf32>
    %c0_15 = arith.constant 0 : index
    %c0_16 = arith.constant 0 : index
    %30 = vector.load %arg8[%c0_15, %c0_16] : memref<104x2xf32, #tpu.memory_space<vmem>>, vector<104x2xf32>
    tpu.vector_store %arg8[%c0_15, %c0_16], %29 {strides = array<i32>} : memref<104x2xf32, #tpu.memory_space<vmem>>, vector<104x2xf32>,
    return
  }
  func.func @transform_0(%arg0: i32) -> (i32, i32) {
    %c0_i32 = arith.constant 0 : i32
    %c0_i32_0 = arith.constant 0 : i32
    return %arg0, %c0_i32 : i32, i32
  }
  func.func @transform_1(%arg0: i32) -> (i32, i32) {
    %c0_i32 = arith.constant 0 : i32
    %c0_i32_0 = arith.constant 0 : i32
    return %arg0, %c0_i32 : i32, i32
  }
  func.func @transform_2(%arg0: i32) -> (i32, i32) {
    %c0_i32 = arith.constant 0 : i32
    %c0_i32_0 = arith.constant 0 : i32
    return %arg0, %c0_i32 : i32, i32
  }
  func.func @transform_3(%arg0: i32) -> (i32, i32) {
    %c0_i32 = arith.constant 0 : i32
    %c0_i32_0 = arith.constant 0 : i32
    %c0_i32_1 = arith.constant 0 : i32
    return %c0_i32, %c0_i32_0 : i32, i32
  }
  func.func @transform_4(%arg0: i32) -> (i32, i32) {
    %c0_i32 = arith.constant 0 : i32
    %c0_i32_0 = arith.constant 0 : i32
    %c0_i32_1 = arith.constant 0 : i32
    return %c0_i32, %c0_i32_0 : i32, i32
  }
  func.func @transform_5(%arg0: i32) -> (i32, i32) {
    %c0_i32 = arith.constant 0 : i32
    %c0_i32_0 = arith.constant 0 : i32
    %c0_i32_1 = arith.constant 0 : i32
    return %c0_i32, %c0_i32_0 : i32, i32
  }
  func.func @transform_6(%arg0: i32) -> (i32, i32) {
    %c0_i32 = arith.constant 0 : i32
    %c0_i32_0 = arith.constant 0 : i32
    %c0_i32_1 = arith.constant 0 : i32
    return %c0_i32, %c0_i32_0 : i32, i32
  }
  func.func @transform_7(%arg0: i32) -> (i32, i32) {
    %c0_i32 = arith.constant 0 : i32
    %c0_i32_0 = arith.constant 0 : i32
    return %arg0, %c0_i32 : i32, i32
  }
}

</mosaic_0001>

<bundles_post_ra>
// kernel: tpu_custom_call.1
= control target key start
LH: loop header
LB: loop body
LE: loop exit
PB: predicated region body
PF: predicated region fallthrough
CT: control target
= control target key end

     0   :  { %s2286_s24 = smov 0   ;;  %s2288_s25 = smov 0   ;;  %s2851_s0 = inlined_call_operand.vmem [shape: bf16[200,32], index: 0, kind: input, shape index: {}]   ;;  %s2852_s1 = inlined_call_operand.vmem [shape: bf16[200,32], index: 1, kind: input, shape index: {}]   ;;  %s2853_s2 = inlined_call_operand.vmem [shape: bf16[200,32], index: 2, kind: input, shape index: {}]   ;;  %s2854_s3 = inlined_call_operand.vmem [shape: bf16[224,32], index: 3, kind: input, shape index: {}]   ;;  %s2855_s4 = inlined_call_operand.vmem [shape: f32[1,32], index: 4, kind: input, shape index: {}]   ;;  %s2856_s5 = inlined_call_operand.vmem [shape: bf16[32,2], index: 5, kind: input, shape index: {}]   ;;  %s2857_s6 = inlined_call_operand.vmem [shape: f32[1,2], index: 6, kind: input, shape index: {}]   ;;  %s2858_s7 = inlined_call_operand.vmem [shape: f32[200,2], index: 7, kind: output, shape index: {}]  }
   0x1   :  { %s2290_s26 = smov 0  }
   0x2 LB: > { %s2299_s27 = sadd.s32 4294967295, %s2206_s26   ;;  %s2301_s28 = sadd.s32 1, %s2206_s26   ;;  %s2206_s26 = sphi %s2290_s26, %s2865_s26   ;;  %s2202_s25 = sphi %s2288_s25, %s2864_s25   ;;  %s2198_s24 = sphi %s2286_s24, %s2863_s24  }
   0x3   : > { %s183_s29 = ssub.s32 %s2206_s26, %s2301_s28  ;;  %s186_s30 = sadd.s32 1, %s2202_s25 }
   0x4   : > { %p184_p0 = scmp.eq.s32.totalorder %s183_s29, 0  ;;  %p196_p1 = scmp.ne.s32.totalorder %s2202_s25, %s2198_s24 }
   0x5   : > { %p197_p2 = scmp.eq.s32.totalorder %s2299_s27, 1  ;;  %p1634_p3 = scmp.ge.s32.totalorder %s2206_s26, 1 }
   0x6   : > { %s2309_s8 = scalar_select %p184_p0, %s2202_s25, %s186_s30  }
   0x7   : > { %p2311_p4 = por %p197_p2, %p196_p1  ;;  %p284_p5 = scmp.lt.s32.totalorder %s2206_s26, 3 }
   0x9   : > { %p285_p6 = pnand %p1634_p3, %p284_p5 }
   0xa   : > { %s2316_s10 = smul.u32 (!%p285_p6), 13, %s2299_s27  ;;  %v2080_v0 = vld [vmem:[%s2854_s3] sm:$0xff] (!%p285_p6)   ;;  %v2240_v1 = vmov (!%p285_p6), 0   ;;  %v2081_v2 = vld [vmem:[%s2854_s3 + $0x8] sm:$0xff] (!%p285_p6)   ;;  %v2082_v3 = vld [vmem:[%s2854_s3 + $0x10] sm:$0xff] (!%p285_p6)   ;;  %s2241_s14 = smov (!%p285_p6), 32  }
   0xb   : > { %288 = sbr.rel (%p285_p6) target bundleno = 732 (0x2dc), region = 48  ;;  %1023 = vmatprep.subr.bf16.mxu0 (!%p285_p6), %v2240_v1  ;;  %v2083_v18 = vld [vmem:[%s2854_s3 + $0x18] sm:$0xff] (!%p285_p6)   ;;  %v2084_v35 = vld [vmem:[%s2854_s3 + $0x20] sm:$0xff] (!%p285_p6)   ;;  %v2085_v49 = vld [vmem:[%s2854_s3 + $0x28] sm:$0xff] (!%p285_p6)   ;;  %s2243_s20 = smov (!%p285_p6), 96   ;;  %vm801_vm0 = vcmask (!%p285_p6), 261120  }
   0xc   : > { %p342_p7 = scmp.lt.s32.totalorder (!%p285_p6), %s2316_s10, 24  ;;  %1024 = vmatpush1.bf16.msra.mxu0 (!%p285_p6), %v2080_v0  ;;  %v2086_v60 = vld [vmem:[%s2854_s3 + $0x30] sm:$0xff] (!%p285_p6)   ;;  %vm815_vm1 = vcmask (!%p285_p6), 523264   ;;  %vm829_vm2 = vcmask (!%p285_p6), 785408   ;;  %vm2245_vm3 = vmmov (!%p285_p6), 0   ;;  %vm1328_vm4 = vcmask (!%p285_p6), 15360  }
   0xd   : > { %1025 = vmatprep.subr.bf16.mxu0 (!%p285_p6), %v2240_v1 }
  0x10   : > { %1026 = vmatpush1.bf16.msra.mxu0 (!%p285_p6), %v2081_v2 }
  0x11   : > { %1027 = vmatprep.subr.bf16.mxu0 (!%p285_p6), %v2240_v1 }
  0x12   : > { %s343_s15 = scalar_select %p342_p7, %s2316_s10, 24 }
  0x13   : > { %s1695_s23 = smul.u32 (%p2311_p4), 104, %s2299_s27 }
  0x14   : > { %s1635_s16 = sshll.u32 %s343_s15, 2  ;;  %1028 = vmatpush1.bf16.msra.mxu0 %v2082_v3  ;;  %s2242_s15 = smov 64  }
  0x15   : > { %s2334_s21 = scalar_lea.vmem %s2853_s2, %s1635_s16  ;;  %s2339_s26 = scalar_lea.vmem %s2851_s0, %s1635_s16  ;;  %1029 = vmatprep.subr.bf16.mxu0 %v2240_v1 }
  0x16   : > { %v1745_v4 = vld [vmem:[%s2334_s21] sm:$0xff]   ;;  %v1778_v6 = vld [vmem:[%s2334_s21 + $0x8] sm:$0xff]   ;;  %s2348_s11 = scalar_lea.vmem %s2852_s1, %s1635_s16  ;;  %v1779_v34 = vld [vmem:[%s2334_s21 + $0x10] sm:$0xff]   ;;  %s334_s16 = sand.u32 1, %s2198_s24  }
  0x17   : > { %v1697_v5 = vld [vmem:[%s2339_s26] sm:$0xff]   ;;  %v1746_v7 = vunpack.c.l.bf16 %v1745_v4  ;;  %v1747_v8 = vunpack.c.h.bf16 %v1745_v4  ;;  %v1768_v12 = vld [vmem:[%s2339_s26 + $0x8] sm:$0xff]   ;;  %v1750_v13 = vunpack.c.l.bf16 %v1778_v6  ;;  %v1751_v14 = vunpack.c.h.bf16 %v1778_v6  ;;  %v1769_v39 = vld [vmem:[%s2339_s26 + $0x10] sm:$0xff]   ;;  %s1824_s17 = smul.u32 104, %s334_s16  ;;  %s1350_s24 = ssub.s32 (%p2311_p4), 25, %s2316_s10 }
  0x18   : > { %v2350_v9 = vunpack.c.l.bf16 %v1697_v5  ;;  %v2352_v10 = vunpack.c.h.bf16 %v1697_v5  ;;  %v1721_v11 = vld [vmem:[%s2348_s11] sm:$0xff]   ;;  %v1773_v17 = vld [vmem:[%s2348_s11 + $0x8] sm:$0xff]   ;;  %v2373_v25 = vunpack.c.l.bf16 %v1768_v12  ;;  %v2377_v27 = vunpack.c.h.bf16 %v1768_v12  ;;  %1030 = vmatpush1.bf16.msra.mxu0 %v2083_v18  ;;  %v1774_v54 = vld [vmem:[%s2348_s11 + $0x10] sm:$0xff]   ;;  %p1351_p8 = scmp.lt.s32.totalorder (%p2311_p4), %s1350_s24, 13  ;;  %s2769_s12 = scalar_lea.vmem (%p2311_p4), %s2858_s7, %s1695_s23  }
  0x19   : > { %v2356_v15 = vunpack.c.l.bf16 %v1721_v11  ;;  %v2358_v16 = vunpack.c.h.bf16 %v1721_v11  ;;  %v1920_v19 = vpack.i.bf16 %v1747_v8, %v1746_v7  ;;  %v1930_v26 = vpack.i.bf16 %v1751_v14, %v1750_v13  ;;  %1031 = vmatprep.subr.bf16.mxu0 %v2240_v1  ;;  %v1770_v58 = vld [vmem:[%s2339_s26 + $0x18] sm:$0xff]   ;;  %s2734_s22 = scalar_lea.vmem [#allocation2], %s1824_s17  }
  0x1a   : > { %v1925_v20 = vpack.i.bf16 %v2352_v10, %v2350_v9  ;;  %v528_v21 = vmul.f32 %v1746_v7, %v2350_v9  ;;  %v529_v24 = vmul.f32 %v1747_v8, %v2352_v10  ;;  %v2379_v28 = vunpack.c.l.bf16 %v1773_v17  ;;  %v1780_v59 = vld [vmem:[%s2334_s21 + $0x18] sm:$0xff]  }
  0x1b   : > { %v515_v22 = vmul.f32 %v2356_v15, %v2350_v9  ;;  %v516_v23 = vmul.f32 %v2358_v16, %v2352_v10  ;;  %1921 = vrot.lane.b32.xlu0 %v1920_v19, %s2241_s14  ;;  %v2381_v29 = vunpack.c.h.bf16 %v1773_v17  ;;  %v491_v31 = vsub.f32 %v1750_v13, %v2373_v25  ;;  %v1775_v19 = vld [vmem:[%s2348_s11 + $0x18] sm:$0xff]  }
  0x1c   : > { %1926 = vrot.lane.b32.xlu1 %v1925_v20, %s2242_s15  ;;  %v489_v32 = vsub.f32 %v1746_v7, %v2350_v9  ;;  %v490_v33 = vsub.f32 %v1747_v8, %v2352_v10  ;;  %v517_v36 = vmul.f32 %v2379_v28, %v2373_v25  ;;  %v492_v38 = vsub.f32 %v1751_v14, %v2377_v27  ;;  %v2087_v8 = vld [vmem:[%s2854_s3 + $0x38] sm:$0xff]   ;;  %v2088_v20 = vld [vmem:[%s2854_s3 + $0x40] sm:$0xff]  }
  0x1d   : > { %v1935_v30 = vpack.i.bf16 %v516_v23, %v515_v22  ;;  %v518_v37 = vmul.f32 %v2381_v29, %v2377_v27  ;;  %v504_v40 = vand.u32 2147483647, %v491_v31  ;;  %v1940_v43 = vpack.i.bf16 %v529_v24, %v528_v21  ;;  %1032 = vmatpush1.bf16.msra.mxu0 %v2084_v35  ;;  %v2089_v35 = vld [vmem:[%s2854_s3 + $0x48] sm:$0xff]  }
  0x1e   : > { %v502_v41 = vand.u32 2147483647, %v489_v32  ;;  %v503_v42 = vand.u32 2147483647, %v490_v33  ;;  %v505_v45 = vand.u32 2147483647, %v492_v38  ;;  %v1754_v46 = vunpack.c.l.bf16 %v1779_v34  ;;  %1033 = vmatprep.subr.bf16.mxu0 %v2240_v1 }
  0x1f   : > { %1931 = vrot.lane.b32.xlu0 %v1930_v26, %s2241_s14  ;;  %v1945_v44 = vpack.i.bf16 %v518_v37, %v517_v36  ;;  %v1755_v47 = vunpack.c.h.bf16 %v1779_v34  ;;  %v2399_v48 = vunpack.c.l.bf16 %v1769_v39  ;;  %v530_v50 = vmul.f32 %v1750_v13, %v2373_v25  ;;  %v1781_v33 = vld [vmem:[%s2334_s21 + $0x20] sm:$0xff]  }
  0x20   : > { %1936 = vrot.lane.b32.xlu1 %v1935_v30, %s2242_s15  ;;  %v531_v51 = vmul.f32 %v1751_v14, %v2377_v27  ;;  %v2406_v52 = vunpack.c.h.bf16 %v1769_v39  ;;  %v1950_v53 = vpack.i.bf16 %v503_v42, %v502_v41  ;;  %v1960_v55 = vpack.i.bf16 %v505_v45, %v504_v40  ;;  %v1771_v34 = vld [vmem:[%s2339_s26 + $0x20] sm:$0xff]  }
  0x21   : > { %v493_v56 = vsub.f32 %v1754_v46, %v2399_v48  ;;  %1034 = vmatpush1.bf16.msra.mxu0 %v2085_v49  ;;  %v1955_v62 = vpack.i.bf16 %v2377_v27, %v2373_v25  ;;  %v2422_v63 = vunpack.c.l.bf16 %v1774_v54  ;;  %v2424_v0 = vunpack.c.h.bf16 %v1774_v54  ;;  %v1772_v54 = vld [vmem:[%s2339_s26 + $0x28] sm:$0xff]  }
  0x22   : > { %v494_v57 = vsub.f32 %v1755_v47, %v2406_v52  ;;  %v1965_v61 = vpack.i.bf16 %v531_v51, %v530_v50  ;;  %1035 = vmatprep.subr.bf16.mxu0 %v2240_v1  ;;  %v2426_v2 = vunpack.c.l.bf16 %v1770_v58  ;;  %v2428_v3 = vunpack.c.h.bf16 %v1770_v58 }
  0x23   : > { %1941 = vrot.lane.b32.xlu0 %v1940_v43, %s2243_s20  ;;  %v506_v4 = vand.u32 2147483647, %v493_v56  ;;  %v2432_v6 = vunpack.c.l.bf16 %v1780_v59  ;;  %v2434_v7 = vunpack.c.h.bf16 %v1780_v59  ;;  %v1975_v11 = vpack.i.bf16 %v1755_v47, %v1754_v46  ;;  %v2091_v56 = vld [vmem:[%s2854_s3 + $0x58] sm:$0xff]  }
  0x24   : > { %1946 = vrot.lane.b32.xlu1 %v1945_v44, %s2242_s15  ;;  %v507_v5 = vand.u32 2147483647, %v494_v57  ;;  %v519_v12 = vmul.f32 %v2422_v63, %v2399_v48  ;;  %v520_v13 = vmul.f32 %v2424_v0, %v2406_v52  ;;  %v532_v21 = vmul.f32 %v1754_v46, %v2399_v48  ;;  %v2090_v44 = vld [vmem:[%s2854_s3 + $0x50] sm:$0xff]  }
  0x25   : > { %1036 = vmatpush1.bf16.msra.mxu0 %v2086_v60  ;;  %v495_v17 = vsub.f32 %v2432_v6, %v2426_v2  ;;  %v496_v18 = vsub.f32 %v2434_v7, %v2428_v3  ;;  %v533_v22 = vmul.f32 %v1755_v47, %v2406_v52  ;;  %v2457_v23 = vunpack.c.l.bf16 %v1775_v19 }
  0x26   : > { %1037 = vmatprep.subr.bf16.mxu0 %v2240_v1  ;;  %v1970_v14 = vpack.i.bf16 %v507_v5, %v506_v4  ;;  %v2459_v24 = vunpack.c.h.bf16 %v1775_v19  ;;  %v1985_v26 = vpack.i.bf16 %v2406_v52, %v2399_v48  ;;  %v1980_v30 = vpack.i.bf16 %v520_v13, %v519_v12  ;;  %v1777_v19 = vld [vmem:[%s2348_s11 + $0x28] sm:$0xff]  }
  0x27   : > { %1951 = vrot.lane.b32.xlu0 %v1950_v53, %s2241_s14  ;;  %v508_v31 = vand.u32 2147483647, %v495_v17  ;;  %v509_v32 = vand.u32 2147483647, %v496_v18  ;;  %v1990_v36 = vpack.i.bf16 %v533_v22, %v532_v21  ;;  %v521_v37 = vmul.f32 %v2457_v23, %v2426_v2  ;;  %v1776_v53 = vld [vmem:[%s2348_s11 + $0x20] sm:$0xff]  }
  0x28   : > { %1961 = vrot.lane.b32.xlu1 %v1960_v55, %s2241_s14  ;;  %v522_v38 = vmul.f32 %v2459_v24, %v2428_v3  ;;  %v1762_v39 = vunpack.c.l.bf16 %v1781_v33  ;;  %v1763_v41 = vunpack.c.h.bf16 %v1781_v33  ;;  %v2477_v42 = vunpack.c.l.bf16 %v1771_v34  ;;  %v1782_v55 = vld [vmem:[%s2334_s21 + $0x28] sm:$0xff]  }
  0x29   : > { %1038 = vmatpush1.bf16.msra.mxu0 %v2087_v8  ;;  %v1995_v40 = vpack.i.bf16 %v509_v32, %v508_v31  ;;  %v2479_v43 = vunpack.c.h.bf16 %v1771_v34  ;;  %v534_v45 = vmul.f32 %v2432_v6, %v2426_v2  ;;  %v535_v46 = vmul.f32 %v2434_v7, %v2428_v3  ;;  %v2092_v8 = vld [vmem:[%s2854_s3 + $0x60] sm:$0xff]  }
  0x2a   : > { %1039 = vmatprep.subr.bf16.mxu0 %v2240_v1  ;;  %v2000_v47 = vpack.i.bf16 %v2434_v7, %v2432_v6  ;;  %v2005_v49 = vpack.i.bf16 %v522_v38, %v521_v37  ;;  %v497_v50 = vsub.f32 %v1762_v39, %v2477_v42  ;;  %v2010_v58 = vpack.i.bf16 %v2428_v3, %v2426_v2 }
  0x2b   : > { %1956 = vrot.lane.b32.xlu0 %v1955_v62, %s2242_s15  ;;  %v498_v51 = vsub.f32 %v1763_v41, %v2479_v43  ;;  %v2015_v57 = vpack.i.bf16 %v535_v46, %v534_v45  ;;  %v2504_v59 = vunpack.c.l.bf16 %v1776_v53  ;;  %v2506_v60 = vunpack.c.h.bf16 %v1776_v53 }
  0x2c   : > { %1966 = vrot.lane.b32.xlu1 %v1965_v61, %s2243_s20  ;;  %v2508_v61 = vunpack.c.l.bf16 %v1772_v54  ;;  %v2510_v62 = vunpack.c.h.bf16 %v1772_v54  ;;  %v510_v4 = vand.u32 2147483647, %v497_v50  ;;  %v1766_v6 = vunpack.c.l.bf16 %v1782_v55 }
  0x2d   : > { %1040 = vmatpush1.bf16.msra.mxu0 %v2088_v20  ;;  %v511_v5 = vand.u32 2147483647, %v498_v51  ;;  %v1767_v7 = vunpack.c.h.bf16 %v1782_v55  ;;  %v523_v12 = vmul.f32 %v2504_v59, %v2477_v42  ;;  %v524_v13 = vmul.f32 %v2506_v60, %v2479_v43  ;;  %v2093_v20 = vld [vmem:[%s2854_s3 + $0x68] sm:$0xff]  }
  0x2e   : > { %1041 = vmatprep.subr.bf16.mxu0 %v2240_v1  ;;  %v499_v17 = vsub.f32 %v1766_v6, %v2508_v61  ;;  %v2035_v21 = vpack.i.bf16 %v2479_v43, %v2477_v42  ;;  %v536_v22 = vmul.f32 %v1762_v39, %v2477_v42  ;;  %v2539_v34 = vunpack.c.h.bf16 %v1777_v19 }
  0x2f   : > { %1971 = vrot.lane.b32.xlu0 %v1970_v14, %s2241_s14  ;;  %v2020_v14 = vpack.i.bf16 %v511_v5, %v510_v4  ;;  %v500_v18 = vsub.f32 %v1767_v7, %v2510_v62  ;;  %v2030_v31 = vpack.i.bf16 %v524_v13, %v523_v12  ;;  %v2050_v45 = vpack.i.bf16 %v1767_v7, %v1766_v6 }
  0x30   : > { %1976 = vrot.lane.b32.xlu1 %v1975_v11, %s2241_s14  ;;  %v2025_v11 = vpack.i.bf16 %v1763_v41, %v1762_v39  ;;  %v512_v32 = vand.u32 2147483647, %v499_v17  ;;  %v526_v39 = vmul.f32 %v2539_v34, %v2510_v62  ;;  %v538_v46 = vmul.f32 %v1766_v6, %v2508_v61 }
  0x31   : > { %1042 = vmatpush1.bf16.msra.mxu0 %v2089_v35  ;;  %v513_v33 = vand.u32 2147483647, %v500_v18  ;;  %v449_v35 = vld [vmem:[%s2334_s21 + $0x30] sm:$0xf]  ;;  %v2060_v54 = vpack.i.bf16 %v2510_v62, %v2508_v61 }
  0x32   : > { %1043 = vmatprep.subr.bf16.mxu0 %v2240_v1 }
  0x33   : > { %1981 = vrot.lane.b32.xlu0 %v1980_v30, %s2242_s15  ;;  %v2535_v30 = vunpack.c.l.bf16 %v1777_v19  ;;  %v2045_v38 = vpack.i.bf16 %v513_v33, %v512_v32  ;;  %v463_v32 = vsub.f32 %v2356_v15, %v2350_v9 }
  0x34   : > { %1986 = vrot.lane.b32.xlu1 %v1985_v26, %s2242_s15  ;;  %v537_v26 = vmul.f32 %v1763_v41, %v2479_v43  ;;  %v462_v41 = vunpack.c.l.bf16 %v449_v35 }
  0x35   : > { %1044 = vmatpush1.bf16.msra.mxu0 %v2090_v44  ;;  %v525_v37 = vmul.f32 %v2535_v30, %v2508_v61  ;;  %v423_v44 = vld [vmem:[%s2348_s11 + $0x30] sm:$0xf] }
  0x36   : > { %1045 = vmatprep.subr.bf16.mxu0 %v2240_v1  ;;  %v2557_v51 = vunpack.c.l.bf16 %v423_v44 }
  0x37   : > { %1991 = vrot.lane.b32.xlu0 %v1990_v36, %s2243_s20  ;;  %v2040_v36 = vpack.i.bf16 %v537_v26, %v536_v22  ;;  %v465_v22 = vsub.f32 %v2379_v28, %v2373_v25  ;;  %v466_v26 = vsub.f32 %v2381_v29, %v2377_v27 }
  0x38   : > { %1996 = vrot.lane.b32.xlu1 %v1995_v40, %s2241_s14 }
  0x39   : > { %1046 = vmatpush1.bf16.msra.mxu0 %v2091_v56 }
  0x3a   : > { %1047 = vmatprep.subr.bf16.mxu0 %v2240_v1 }
  0x3b   : > { %2001 = vrot.lane.b32.xlu0 %v2000_v47, %s2241_s14  ;;  %v2055_v47 = vpack.i.bf16 %v526_v39, %v525_v37  ;;  %v478_v37 = vand.u32 2147483647, %v465_v22 }
  0x3c   : > { %2006 = vrot.lane.b32.xlu1 %v2005_v49, %s2242_s15  ;;  %v539_v49 = vmul.f32 %v1767_v7, %v2510_v62 }
  0x3d   : > { %1048 = vmatpush1.bf16.msra.mxu0 %v2092_v8 }
  0x3e   : > { %1049 = vmatprep.subr.bf16.mxu0 %v2240_v1  ;;  %v397_v1 = vld [vmem:[%s2339_s26 + $0x30] sm:$0xf]  ;;  %v2065_v53 = vpack.i.bf16 %v539_v49, %v538_v46 }
  0x3f   : > { %2011 = vrot.lane.b32.xlu0 %v2010_v58, %s2242_s15  ;;  %v2549_v40 = vunpack.c.l.bf16 %v397_v1 }
  0x40   : > { %2016 = vrot.lane.b32.xlu1 %v2015_v57, %s2243_s20 }
  0x41   : > { %1050 = vmatpush1.bf16.msra.mxu0 %v2093_v20  ;;  %v501_v50 = vsub.f32 %v462_v41, %v2549_v40  ;;  %v527_v56 = vmul.f32 %v2557_v51, %v2549_v40  ;;  %v540_v4 = vmul.f32 %v462_v41, %v2549_v40 }
  0x43   : > { %2021 = vrot.lane.b32.xlu0 %v2020_v14, %s2241_s14  ;;  %v514_v55 = vand.u32 2147483647, %v501_v50  ;;  %v2075_v58 = vpack.i.bf16 %v2549_v40, %v527_v56 }
  0x44   : > { %2026 = vrot.lane.b32.xlu1 %v2025_v11, %s2241_s14 }
  0x45   : > { %v2070_v57 = vpack.i.bf16 %v462_v41, %v514_v55  ;;  %v476_v41 = vand.u32 2147483647, %v463_v32  ;;  %v468_v32 = vsub.f32 %v2424_v0, %v2406_v52 }
  0x47   : > { %2031 = vrot.lane.b32.xlu0 %v2030_v31, %s2242_s15  ;;  %v464_v31 = vsub.f32 %v2358_v16, %v2352_v10 }
  0x48   : > { %2036 = vrot.lane.b32.xlu1 %v2035_v21, %s2242_s15 }
  0x49   : > { %v477_v39 = vand.u32 2147483647, %v464_v31  ;;  %v467_v31 = vsub.f32 %v2422_v63, %v2399_v48 }
  0x4b   : > { %2041 = vrot.lane.b32.xlu0 %v2040_v36, %s2243_s20 }
  0x4c   : > { %2046 = vrot.lane.b32.xlu1 %v2045_v38, %s2241_s14  ;;  %v479_v38 = vand.u32 2147483647, %v466_v26 }
  0x4f   : > { %2051 = vrot.lane.b32.xlu0 %v2050_v45, %s2241_s14 }
  0x50   : > { %2056 = vrot.lane.b32.xlu1 %v2055_v47, %s2242_s15 }
  0x53   : > { %2061 = vrot.lane.b32.xlu0 %v2060_v54, %s2242_s15 }
  0x54   : > { %2066 = vrot.lane.b32.xlu1 %v2065_v53, %s2243_s20 }
  0x57   : > { %2071 = vrot.lane.b32.xlu0 %v2070_v57, %s2241_s14 }
  0x58   : > { %2076 = vrot.lane.b32.xlu1 %v2075_v58, %s2242_s15 }
  0x5b   : > { %682 = vrot.lane.b32.xlu0 %v540_v4, %s2243_s20 }
  0x8d   : > { %v1922_v5 = vpop.permute.xlu0 %1921 }
  0x8e   : > { %v1927_v6 = vpop.permute.xlu1 %1926  ;;  %v1924_v7 = vunpack.i.h.bf16 %v1922_v5  ;;  %v1923_v8 = vunpack.i.l.bf16 %v1922_v5 }
  0x8f   : > { %v1929_v11 = vunpack.i.h.bf16 %v1927_v6  ;;  %v1928_v12 = vunpack.i.l.bf16 %v1927_v6 }
  0x90   : > { %v843_v13 = vsel %vm801_vm0, %v2356_v15, %v1923_v8  ;;  %v844_v14 = vsel %vm801_vm0, %v2358_v16, %v1924_v7 }
  0x91   : > { %v1932_v17 = vpop.permute.xlu0 %1931  ;;  %v856_v19 = vsel %vm815_vm1, %v843_v13, %v1928_v12  ;;  %v857_v20 = vsel %vm815_vm1, %v844_v14, %v1929_v11 }
  0x92   : > { %v1937_v18 = vpop.permute.xlu1 %1936  ;;  %v870_v21 = vpack.c.bf16 %v857_v20, %v856_v19  ;;  %v1934_v35 = vunpack.i.h.bf16 %v1932_v17  ;;  %v1933_v36 = vunpack.i.l.bf16 %v1932_v17 }
  0x93   : > { %v1939_v25 = vunpack.i.h.bf16 %v1937_v18  ;;  %v1938_v44 = vunpack.i.l.bf16 %v1937_v18 }
  0x94   : > { %1653 = vmatprep.mubr.msk.bf16.mxu0 %vm829_vm2, %v870_v21  ;;  %v845_v9 = vsel %vm801_vm0, %v2379_v28, %v1933_v36  ;;  %v846_v15 = vsel %vm801_vm0, %v2381_v29, %v1934_v35 }
  0x95   : > { %v1942_v33 = vpop.permute.xlu0 %1941 }
  0x96   : > { %v1947_v1 = vpop.permute.xlu1 %1946  ;;  %v1944_v49 = vunpack.i.h.bf16 %v1942_v33  ;;  %v1943_v50 = vunpack.i.l.bf16 %v1942_v33 }
  0x97   : > { %v1949_v57 = vunpack.i.h.bf16 %v1947_v1  ;;  %v1948_v58 = vunpack.i.l.bf16 %v1947_v1 }
  0x99   : > { %v1952_v27 = vpop.permute.xlu0 %1951 }
  0x9a   : > { %v1962_v45 = vpop.permute.xlu1 %1961  ;;  %v1954_v10 = vunpack.i.h.bf16 %v1952_v27  ;;  %v1953_v16 = vunpack.i.l.bf16 %v1952_v27 }
  0x9b   : > { %v1964_v46 = vunpack.i.h.bf16 %v1962_v45  ;;  %v1963_v47 = vunpack.i.l.bf16 %v1962_v45 }
  0x9c   : > { %v803_v55 = vsel %vm801_vm0, %v477_v39, %v1954_v10  ;;  %v802_v56 = vsel %vm801_vm0, %v476_v41, %v1953_v16  ;;  %v481_v39 = vand.u32 2147483647, %v468_v32 }
  0x9d   : > { %v805_v53 = vsel %vm801_vm0, %v479_v38, %v1964_v46  ;;  %v804_v54 = vsel %vm801_vm0, %v478_v37, %v1963_v47  ;;  %v1957_v5 = vpop.permute.xlu0 %1956  ;;  %v816_v6 = vsel %vm815_vm1, %v802_v56, %v1938_v44  ;;  %v817_v28 = vsel %vm815_vm1, %v803_v55, %v1939_v25 }
  0x9e   : > { %v1967_v4 = vpop.permute.xlu1 %1966  ;;  %v1959_v8 = vunpack.i.h.bf16 %v1957_v5  ;;  %v1958_v11 = vunpack.i.l.bf16 %v1957_v5  ;;  %v830_v12 = vsel %vm829_vm2, %v816_v6, %v1943_v50  ;;  %v831_v13 = vsel %vm829_vm2, %v817_v28, %v1944_v49 }
  0x9f   : > { %v1969_v7 = vunpack.i.h.bf16 %v1967_v4  ;;  %v1968_v29 = vunpack.i.l.bf16 %v1967_v4  ;;  %v818_v14 = vsel %vm815_vm1, %v804_v54, %v1948_v58  ;;  %v819_v17 = vsel %vm815_vm1, %v805_v53, %v1949_v57 }
  0xa0   : > { %v859_v18 = vsel %vm815_vm1, %v846_v15, %v1959_v8  ;;  %v858_v19 = vsel %vm815_vm1, %v845_v9, %v1958_v11  ;;  %v869_v20 = vpack.c.bf16 %v831_v13, %v830_v12  ;;  %v480_v38 = vand.u32 2147483647, %v467_v31 }
  0xa1   : > { %v832_v21 = vsel %vm829_vm2, %v818_v14, %v1968_v29  ;;  %v872_v22 = vpack.c.bf16 %v859_v18, %v858_v19  ;;  %v1972_v33 = vpop.permute.xlu0 %1971  ;;  %v833_v1 = vsel %vm829_vm2, %v819_v17, %v1969_v7  ;;  %v469_v15 = vsub.f32 %v2457_v23, %v2426_v2 }
  0xa2   : > { %v1977_v26 = vpop.permute.xlu1 %1976  ;;  %1056 = vmatmul.mubr.bf16.vlgmr.msra.gmra.mrb[0].mxu0 %v869_v20  ;;  %v871_v37 = vpack.c.bf16 %v833_v1, %v832_v21  ;;  %v1974_v44 = vunpack.i.h.bf16 %v1972_v33  ;;  %v1973_v45 = vunpack.i.l.bf16 %v1972_v33  ;;  %v470_v50 = vsub.f32 %v2459_v24, %v2428_v3 }
  0xa3   : > { %v1979_v35 = vunpack.i.h.bf16 %v1977_v26  ;;  %v1978_v36 = vunpack.i.l.bf16 %v1977_v26  ;;  %1654 = vmatprep.mubr.msk.bf16.mxu0 %vm829_vm2, %v872_v22  ;;  %v482_v2 = vand.u32 2147483647, %v469_v15 }
  0xa4   : > { %v806_v55 = vsel %vm801_vm0, %v480_v38, %v1973_v45  ;;  %v483_v5 = vand.u32 2147483647, %v470_v50  ;;  %v472_v45 = vsub.f32 %v2506_v60, %v2479_v43 }
  0xa5   : > { %v1982_v25 = vpop.permute.xlu0 %1981  ;;  %v848_v52 = vsel %vm801_vm0, %v2424_v0, %v1979_v35  ;;  %v847_v46 = vsel %vm801_vm0, %v2422_v63, %v1978_v36  ;;  %v807_v0 = vsel %vm801_vm0, %v481_v39, %v1974_v44  ;;  %v471_v44 = vsub.f32 %v2504_v59, %v2477_v42 }
  0xa6   : > { %v1987_v41 = vpop.permute.xlu1 %1986  ;;  %v1984_v47 = vunpack.i.h.bf16 %v1982_v25  ;;  %v1983_v10 = vunpack.i.l.bf16 %v1982_v25 }
  0xa7   : > { %v1989_v27 = vunpack.i.h.bf16 %v1987_v41  ;;  %v1988_v48 = vunpack.i.l.bf16 %v1987_v41 }
  0xa8   : > { %v820_v57 = vsel %vm815_vm1, %v806_v55, %v1983_v10  ;;  %v821_v58 = vsel %vm815_vm1, %v807_v0, %v1984_v47  ;;  %v473_v55 = vsub.f32 %v2535_v30, %v2508_v61 }
  0xa9   : > { %v860_v16 = vsel %vm815_vm1, %v847_v46, %v1988_v48  ;;  %v861_v9 = vsel %vm815_vm1, %v848_v52, %v1989_v27  ;;  %v1992_v54 = vpop.permute.xlu0 %1991  ;;  %v484_v52 = vand.u32 2147483647, %v471_v44  ;;  %v485_v46 = vand.u32 2147483647, %v472_v45 }
  0xaa   : > { %v874_v49 = vpack.c.bf16 %v861_v9, %v860_v16  ;;  %v1997_v53 = vpop.permute.xlu1 %1996  ;;  %v1994_v63 = vunpack.i.h.bf16 %v1992_v54  ;;  %v1993_v56 = vunpack.i.l.bf16 %v1992_v54  ;;  %1064 = vmatmul.mubr.bf16.gmra.mrb[4].mxu0 %v871_v37 }
  0xab   : > { %v1999_v6 = vunpack.i.h.bf16 %v1997_v53  ;;  %v1998_v28 = vunpack.i.l.bf16 %v1997_v53 }
  0xac   : > { %1655 = vmatprep.mubr.msk.bf16.mxu0 %vm829_vm2, %v874_v49  ;;  %v834_v4 = vsel %vm829_vm2, %v820_v57, %v1993_v56  ;;  %v835_v3 = vsel %vm829_vm2, %v821_v58, %v1994_v63  ;;  %v474_v63 = vsub.f32 %v2539_v34, %v2510_v62 }
  0xad   : > { %v2002_v29 = vpop.permute.xlu0 %2001  ;;  %v873_v8 = vpack.c.bf16 %v835_v3, %v834_v4  ;;  %v809_v17 = vsel %vm801_vm0, %v483_v5, %v1999_v6  ;;  %v808_v18 = vsel %vm801_vm0, %v482_v2, %v1998_v28  ;;  %v486_v6 = vand.u32 2147483647, %v473_v55 }
  0xae   : > { %v2007_v7 = vpop.permute.xlu1 %2006  ;;  %v2004_v13 = vunpack.i.h.bf16 %v2002_v29  ;;  %v2003_v14 = vunpack.i.l.bf16 %v2002_v29  ;;  %v487_v61 = vand.u32 2147483647, %v474_v63 }
  0xaf   : > { %v2009_v11 = vunpack.i.h.bf16 %v2007_v7  ;;  %v2008_v12 = vunpack.i.l.bf16 %v2007_v7 }
  0xb0   : > { %v850_v1 = vsel %vm801_vm0, %v2459_v24, %v2004_v13  ;;  %v849_v35 = vsel %vm801_vm0, %v2457_v23, %v2003_v14  ;;  %v475_v13 = vsub.f32 %v2557_v51, %v2549_v40 }
  0xb1   : > { %v2012_v20 = vpop.permute.xlu0 %2011  ;;  %v822_v32 = vsel %vm815_vm1, %v808_v18, %v2008_v12  ;;  %v823_v33 = vsel %vm815_vm1, %v809_v17, %v2009_v11 }
  0xb2   : > { %v2017_v19 = vpop.permute.xlu1 %2016  ;;  %v2014_v26 = vunpack.i.h.bf16 %v2012_v20  ;;  %v2013_v31 = vunpack.i.l.bf16 %v2012_v20  ;;  %1072 = vmatmul.mubr.bf16.gmra.mrb[8].mxu0 %v873_v8 }
  0xb3   : > { %v2019_v21 = vunpack.i.h.bf16 %v2017_v19  ;;  %v2018_v22 = vunpack.i.l.bf16 %v2017_v19 }
  0xb4   : > { %v862_v36 = vsel %vm815_vm1, %v849_v35, %v2013_v31  ;;  %v863_v37 = vsel %vm815_vm1, %v850_v1, %v2014_v26  ;;  %v488_v31 = vand.u32 2147483647, %v475_v13 }
  0xb5   : > { %v836_v38 = vsel %vm829_vm2, %v822_v32, %v2018_v22  ;;  %v837_v39 = vsel %vm829_vm2, %v823_v33, %v2019_v21  ;;  %v876_v41 = vpack.c.bf16 %v863_v37, %v862_v36  ;;  %v2022_v24 = vpop.permute.xlu0 %2021 }
  0xb6   : > { %v2027_v25 = vpop.permute.xlu1 %2026  ;;  %v875_v27 = vpack.c.bf16 %v837_v39, %v836_v38  ;;  %v2024_v16 = vunpack.i.h.bf16 %v2022_v24  ;;  %v2023_v9 = vunpack.i.l.bf16 %v2022_v24 }
  0xb7   : > { %v2029_v48 = vunpack.i.h.bf16 %v2027_v25  ;;  %v2028_v23 = vunpack.i.l.bf16 %v2027_v25  ;;  %1656 = vmatprep.mubr.msk.bf16.mxu0 %vm829_vm2, %v876_v41 }
  0xb8   : > { %v810_v2 = vsel %vm801_vm0, %v484_v52, %v2023_v9 }
  0xb9   : > { %v2032_v10 = vpop.permute.xlu0 %2031  ;;  %v852_v42 = vsel %vm801_vm0, %v2506_v60, %v2029_v48  ;;  %v851_v43 = vsel %vm801_vm0, %v2504_v59, %v2028_v23  ;;  %v811_v60 = vsel %vm801_vm0, %v485_v46, %v2024_v16 }
  0xba   : > { %v2037_v47 = vpop.permute.xlu1 %2036  ;;  %1080 = vmatmul.mubr.bf16.gmra.mrb[12].mxu0 %v875_v27  ;;  %v2034_v50 = vunpack.i.h.bf16 %v2032_v10  ;;  %v2033_v53 = vunpack.i.l.bf16 %v2032_v10 }
  0xbb   : > { %v2039_v15 = vunpack.i.h.bf16 %v2037_v47  ;;  %v2038_v49 = vunpack.i.l.bf16 %v2037_v47 }
  0xbc   : > { %v824_v3 = vsel %vm815_vm1, %v810_v2, %v2033_v53  ;;  %v825_v5 = vsel %vm815_vm1, %v811_v60, %v2034_v50  ;;  %v2095_v50 = vld [vmem:[%s2856_s5 + $0x8] sm:$0xff]   ;;  %v2696_v53 = vld [vmem:[%s2855_s4] ss:$0 sm:$0xff] }
  0xbd   : > { %v864_v54 = vsel %vm815_vm1, %v851_v43, %v2038_v49  ;;  %v865_v0 = vsel %vm815_vm1, %v852_v42, %v2039_v15  ;;  %v2042_v58 = vpop.permute.xlu0 %2041  ;;  %v2094_v43 = vld [vmem:[%s2856_s5] sm:$0xff]  }
  0xbe   : > { %v878_v56 = vpack.c.bf16 %v865_v0, %v864_v54  ;;  %v2047_v57 = vpop.permute.xlu1 %2046  ;;  %v2044_v59 = vunpack.i.h.bf16 %v2042_v58  ;;  %v2043_v4 = vunpack.i.l.bf16 %v2042_v58 }
  0xbf   : > { %v2049_v7 = vunpack.i.h.bf16 %v2047_v57  ;;  %v2048_v29 = vunpack.i.l.bf16 %v2047_v57 }
  0xc0   : > { %1657 = vmatprep.mubr.msk.bf16.mxu0 %vm829_vm2, %v878_v56  ;;  %v838_v28 = vsel %vm829_vm2, %v824_v3, %v2043_v4  ;;  %v839_v62 = vsel %vm829_vm2, %v825_v5, %v2044_v59 }
  0xc1   : > { %v2052_v11 = vpop.permute.xlu0 %2051  ;;  %v877_v12 = vpack.c.bf16 %v839_v62, %v838_v28  ;;  %v813_v20 = vsel %vm801_vm0, %v487_v61, %v2049_v7  ;;  %v812_v21 = vsel %vm801_vm0, %v486_v6, %v2048_v29 }
  0xc2   : > { %v2057_v8 = vpop.permute.xlu1 %2056  ;;  %v2054_v18 = vunpack.i.h.bf16 %v2052_v11  ;;  %v2053_v19 = vunpack.i.l.bf16 %v2052_v11 }
  0xc3   : > { %v2059_v14 = vunpack.i.h.bf16 %v2057_v8  ;;  %v2058_v17 = vunpack.i.l.bf16 %v2057_v8  ;;  %1088 = vmatmul.mubr.bf16.gmra.mrb[16].mxu0 %v877_v12 }
  0xc4   : > { %v854_v37 = vsel %vm801_vm0, %v2539_v34, %v2054_v18  ;;  %v853_v38 = vsel %vm801_vm0, %v2535_v30, %v2053_v19 }
  0xc5   : > { %v2062_v26 = vpop.permute.xlu0 %2061  ;;  %v826_v36 = vsel %vm815_vm1, %v812_v21, %v2058_v17  ;;  %v827_v40 = vsel %vm815_vm1, %v813_v20, %v2059_v14 }
  0xc6   : > { %v2067_v22 = vpop.permute.xlu1 %2066  ;;  %v2064_v1 = vunpack.i.h.bf16 %v2062_v26  ;;  %v2063_v35 = vunpack.i.l.bf16 %v2062_v26 }
  0xc7   : > { %v2069_v32 = vunpack.i.h.bf16 %v2067_v22  ;;  %v2068_v33 = vunpack.i.l.bf16 %v2067_v22 }
  0xc8   : > { %v866_v39 = vsel %vm815_vm1, %v853_v38, %v2063_v35  ;;  %v867_v41 = vsel %vm815_vm1, %v854_v37, %v2064_v1 }
  0xc9   : > { %v840_v25 = vsel %vm829_vm2, %v826_v36, %v2068_v33  ;;  %v841_v44 = vsel %vm829_vm2, %v827_v40, %v2069_v32  ;;  %v880_v45 = vpack.c.bf16 %v867_v41, %v866_v39  ;;  %v2072_v24 = vpop.permute.xlu0 %2071 }
  0xca   : > { %v879_v27 = vpack.c.bf16 %v841_v44, %v840_v25  ;;  %v2077_v48 = vpop.permute.xlu1 %2076  ;;  %v2074_v23 = vunpack.i.h.bf16 %v2072_v24  ;;  %v2073_v52 = vunpack.i.l.bf16 %v2072_v24 }
  0xcb   : > { %v2079_v46 = vunpack.i.h.bf16 %v2077_v48  ;;  %v2078_v47 = vunpack.i.l.bf16 %v2077_v48  ;;  %1658 = vmatprep.mubr.msk.bf16.mxu0 %vm829_vm2, %v880_v45 }
  0xcc   : > { %v855_v30 = vsel %vm801_vm0, %v2557_v51, %v2074_v23  ;;  %1096 = vmatmul.mubr.bf16.gmra.mrb[20].mxu0 %v879_v27  ;;  %v814_v34 = vsel %vm801_vm0, %v488_v31, %v2073_v52  ;;  %v2244_v51 = vmov 0.0  }
  0xcd   : > { %v868_v10 = vsel %vm815_vm1, %v855_v30, %v2079_v46  ;;  %v683_v16 = vpop.permute.xlu0 %682  ;;  %v828_v9 = vsel %vm815_vm1, %v814_v34, %v2078_v47  ;;  %1792 = vmatprep.subr.bf16.mxu1 %v2244_v51  ;;  %1796 = vmatprep.mubr.msk.bf16.mxu1 %vm2245_vm3, %v2244_v51 }
  0xce   : > { %v882_v15 = vpack.c.bf16 %v868_v10, %v868_v10  ;;  %v842_v49 = vsel %vm829_vm2, %v828_v9, %v683_v16  ;;  %1793 = vmatpush3.bf16.msra.mxu1 %v2094_v43 }
  0xcf   : > { %v881_v42 = vpack.c.bf16 %v842_v49, %v842_v49  ;;  %1794 = vmatprep.subr.bf16.mxu1 %v2244_v51 }
  0xd0   : > { %1659 = vmatprep.mubr.msk.bf16.mxu0 %vm829_vm2, %v882_v15 }
  0xd2   : > { %1795 = vmatpush3.bf16.msra.mxu1 %v2095_v50 }
  0xd4   : > { %1104 = vmatmul.mubr.bf16.gmra.mrb[24].mxu0 %v881_v42 }
 0x175   : > { %v1057_v54 = vpop.f32.mrb[0].mxu0 }
 0x176   : > { %v1058_v0 = vadd.f32 %v2696_v53, %v1057_v54  ;;  %v1059_v55 = vpop.f32.mrb[1].mxu0 }
 0x177   : > { %v1060_v63 = vpop.f32.mrb[2].mxu0 }
 0x178   : > { %v1660_v56 = vmul.f32 -1.442695, %v1058_v0  ;;  %v1061_v57 = vadd.f32 %v2696_v53, %v1060_v63  ;;  %v1062_v58 = vpop.f32.mrb[3].mxu0 }
 0x17a   : > { %2096 = vpow2.f32 %v1660_v56  ;;  %v1661_v60 = vmul.f32 -1.442695, %v1061_v57 }
 0x17c   : > { %2098 = vpow2.f32 %v1661_v60 }
 0x17d   : > { %v1065_v2 = vpop.f32.mrb[4].mxu0 }
 0x17e   : > { %v1066_v59 = vadd.f32 %v2696_v53, %v1065_v2  ;;  %v1067_v4 = vpop.f32.mrb[5].mxu0 }
 0x17f   : > { %v1068_v3 = vpop.f32.mrb[6].mxu0 }
 0x180   : > { %v1662_v5 = vmul.f32 -1.442695, %v1066_v59  ;;  %v1069_v6 = vadd.f32 %v2696_v53, %v1068_v3  ;;  %v1070_v61 = vpop.f32.mrb[7].mxu0 }
 0x182   : > { %2100 = vpow2.f32 %v1662_v5  ;;  %v1663_v28 = vmul.f32 -1.442695, %v1069_v6 }
 0x184   : > { %v2097_v62 = vpop.eup %2096  ;;  %2102 = vpow2.f32 %v1663_v28 }
 0x185   : > { %v1150_v7 = vadd.f32 1.0, %v2097_v62  ;;  %v1073_v29 = vpop.f32.mrb[8].mxu0 }
 0x186   : > { %v2099_v8 = vpop.eup %2098  ;;  %v1074_v11 = vadd.f32 %v2696_v53, %v1073_v29  ;;  %v1075_v12 = vpop.f32.mrb[9].mxu0 }
 0x187   : > { %v1151_v13 = vadd.f32 1.0, %v2099_v8  ;;  %v1076_v14 = vpop.f32.mrb[10].mxu0  ;;  %2104 = vrcp.f32 %v1150_v7 }
 0x188   : > { %v1664_v17 = vmul.f32 -1.442695, %v1074_v11  ;;  %v1077_v18 = vadd.f32 %v2696_v53, %v1076_v14  ;;  %v1078_v19 = vpop.f32.mrb[11].mxu0 }
 0x189   : > { %2106 = vrcp.f32 %v1151_v13 }
 0x18a   : > { %2108 = vpow2.f32 %v1664_v17  ;;  %v1665_v20 = vmul.f32 -1.442695, %v1077_v18 }
 0x18c   : > { %v2101_v21 = vpop.eup %2100  ;;  %2110 = vpow2.f32 %v1665_v20 }
 0x18d   : > { %v1152_v22 = vadd.f32 1.0, %v2101_v21  ;;  %v1081_v26 = vpop.f32.mrb[12].mxu0 }
 0x18e   : > { %v2103_v31 = vpop.eup %2102  ;;  %v1082_v32 = vadd.f32 %v2696_v53, %v1081_v26  ;;  %v1083_v33 = vpop.f32.mrb[13].mxu0 }
 0x18f   : > { %v1153_v1 = vadd.f32 1.0, %v2103_v31  ;;  %v1084_v35 = vpop.f32.mrb[14].mxu0  ;;  %2112 = vrcp.f32 %v1152_v22 }
 0x190   : > { %v1666_v36 = vmul.f32 -1.442695, %v1082_v32  ;;  %v1085_v40 = vadd.f32 %v2696_v53, %v1084_v35  ;;  %v1086_v37 = vpop.f32.mrb[15].mxu0 }
 0x191   : > { %2114 = vrcp.f32 %v1153_v1  ;;  %v2105_v38 = vpop.eup %2104 }
 0x192   : > { %2116 = vpow2.f32 %v1666_v36  ;;  %v1667_v39 = vmul.f32 -1.442695, %v1085_v40  ;;  %v1673_v40 = vld [vmem:[%s2857_s6] ss:$0 sm:$0xff] }
 0x193   : > { %v2107_v41 = vpop.eup %2106 }
 0x194   : > { %v2109_v25 = vpop.eup %2108  ;;  %2118 = vpow2.f32 %v1667_v39  ;;  %v1189_v44 = vpack.c.bf16 %v2107_v41, %v2105_v38 }
 0x195   : > { %v1154_v45 = vadd.f32 1.0, %v2109_v25 }
 0x196   : > { %v2111_v24 = vpop.eup %2110  ;;  %1797 = vmatmul.mubr.msk.bf16.vlgmr.msra.gmra.mrb[0].mxu1 %vm801_vm0, %v1189_v44  ;;  %v1089_v27 = vpop.f32.mrb[16].mxu0 }
 0x197   : > { %v1155_v48 = vadd.f32 1.0, %v2111_v24  ;;  %v1090_v23 = vadd.f32 %v2696_v53, %v1089_v27  ;;  %v1091_v52 = vpop.f32.mrb[17].mxu0  ;;  %1800 = vmatprep.mubr.msk.bf16.mxu1 %vm2245_vm3, %v2244_v51  ;;  %2120 = vrcp.f32 %v1154_v45 }
 0x198   : > { %v1092_v46 = vpop.f32.mrb[18].mxu0 }
 0x199   : > { %2122 = vrcp.f32 %v1155_v48  ;;  %v1668_v47 = vmul.f32 -1.442695, %v1090_v23  ;;  %v1093_v30 = vadd.f32 %v2696_v53, %v1092_v46  ;;  %v1094_v34 = vpop.f32.mrb[19].mxu0  ;;  %v2113_v10 = vpop.eup %2112 }
 0x19b   : > { %v2115_v16 = vpop.eup %2114  ;;  %2124 = vpow2.f32 %v1668_v47  ;;  %v1669_v9 = vmul.f32 -1.442695, %v1093_v30 }
 0x19c   : > { %v2117_v15 = vpop.eup %2116  ;;  %v1190_v49 = vpack.c.bf16 %v2115_v16, %v2113_v10 }
 0x19d   : > { %v1156_v42 = vadd.f32 1.0, %v2117_v15  ;;  %2126 = vpow2.f32 %v1669_v9 }
 0x19e   : > { %v2119_v43 = vpop.eup %2118  ;;  %1801 = vmatmul.mubr.msk.bf16.gmra.mrb[4].mxu1 %vm801_vm0, %v1190_v49 }
 0x19f   : > { %v1157_v50 = vadd.f32 1.0, %v2119_v43  ;;  %v1097_v54 = vpop.f32.mrb[20].mxu0  ;;  %1804 = vmatprep.mubr.msk.bf16.mxu1 %vm2245_vm3, %v2244_v51  ;;  %2128 = vrcp.f32 %v1156_v42 }
 0x1a0   : > { %v1098_v0 = vadd.f32 %v2696_v53, %v1097_v54  ;;  %v1099_v55 = vpop.f32.mrb[21].mxu0 }
 0x1a1   : > { %2130 = vrcp.f32 %v1157_v50  ;;  %v1100_v63 = vpop.f32.mrb[22].mxu0  ;;  %v2121_v56 = vpop.eup %2120 }
 0x1a2   : > { %v1670_v57 = vmul.f32 -1.442695, %v1098_v0  ;;  %v1101_v58 = vadd.f32 %v2696_v53, %v1100_v63  ;;  %v1102_v60 = vpop.f32.mrb[23].mxu0 }
 0x1a3   : > { %v2123_v2 = vpop.eup %2122 }
 0x1a4   : > { %2132 = vpow2.f32 %v1670_v57  ;;  %v1671_v59 = vmul.f32 -1.442695, %v1101_v58  ;;  %v1191_v4 = vpack.c.bf16 %v2123_v2, %v2121_v56 }
 0x1a5   : > { %v2125_v3 = vpop.eup %2124 }
 0x1a6   : > { %v1158_v5 = vadd.f32 1.0, %v2125_v3  ;;  %2134 = vpow2.f32 %v1671_v59  ;;  %1805 = vmatmul.mubr.msk.bf16.gmra.mrb[8].mxu1 %vm801_vm0, %v1191_v4 }
 0x1a7   : > { %v2127_v6 = vpop.eup %2126  ;;  %v1105_v61 = vpop.f32.mrb[24].mxu0  ;;  %1808 = vmatprep.mubr.msk.bf16.mxu1 %vm2245_vm3, %v2244_v51 }
 0x1a8   : > { %v1159_v28 = vadd.f32 1.0, %v2127_v6  ;;  %v1106_v62 = vadd.f32 %v2696_v53, %v1105_v61  ;;  %v1107_v7 = vpop.f32.mrb[25].mxu0  ;;  %2136 = vrcp.f32 %v1158_v5 }
 0x1a9   : > { %v1108_v29 = vpop.f32.mrb[26].mxu0  ;;  %v2129_v8 = vpop.eup %2128 }
 0x1aa   : > { %2138 = vrcp.f32 %v1159_v28  ;;  %v1672_v11 = vmul.f32 -1.442695, %v1106_v62  ;;  %v1109_v12 = vpop.f32.mrb[27].mxu0 }
 0x1ab   : > { %v2131_v13 = vpop.eup %2130 }
 0x1ac   : > { %2140 = vpow2.f32 %v1672_v11  ;;  %v1192_v14 = vpack.c.bf16 %v2131_v13, %v2129_v8 }
 0x1ae   : > { %v2133_v17 = vpop.eup %2132  ;;  %1809 = vmatmul.mubr.msk.bf16.gmra.mrb[12].mxu1 %vm801_vm0, %v1192_v14 }
 0x1af   : > { %v1160_v18 = vadd.f32 1.0, %v2133_v17  ;;  %1812 = vmatprep.mubr.msk.bf16.mxu1 %vm2245_vm3, %v2244_v51 }
 0x1b0   : > { %v2135_v19 = vpop.eup %2134 }
 0x1b1   : > { %v1161_v20 = vadd.f32 1.0, %v2135_v19  ;;  %2142 = vrcp.f32 %v1160_v18 }
 0x1b2   : > { %v2137_v53 = vpop.eup %2136 }
 0x1b3   : > { %2144 = vrcp.f32 %v1161_v20 }
 0x1b4   : > { %v2139_v21 = vpop.eup %2138 }
 0x1b5   : > { %v1193_v22 = vpack.c.bf16 %v2139_v21, %v2137_v53 }
 0x1b6   : > { %v2141_v26 = vpop.eup %2140 }
 0x1b7   : > { %v1162_v31 = vadd.f32 1.0, %v2141_v26  ;;  %1813 = vmatmul.mubr.msk.bf16.gmra.mrb[16].mxu1 %vm801_vm0, %v1193_v22 }
 0x1b8   : > { %1816 = vmatprep.mubr.msk.bf16.mxu1 %vm2245_vm3, %v2244_v51 }
 0x1b9   : > { %2146 = vrcp.f32 %v1162_v31 }
 0x1bb   : > { %v2143_v32 = vpop.eup %2142 }
 0x1bd   : > { %v2145_v33 = vpop.eup %2144 }
 0x1be   : > { %v1194_v1 = vpack.c.bf16 %v2145_v33, %v2143_v32 }
 0x1c0   : > { %1817 = vmatmul.mubr.msk.bf16.gmra.mrb[20].mxu1 %vm801_vm0, %v1194_v1 }
 0x1c1   : > { %1820 = vmatprep.mubr.msk.bf16.mxu1 %vm2245_vm3, %v2244_v51 }
 0x1c3   : > { %v2147_v35 = vpop.eup %2146 }
 0x1c4   : > { %v1195_v36 = vpack.c.bf16 %v2147_v35, %v2147_v35 }
 0x1c8   : > { %1821 = vmatmul.mubr.msk.bf16.gmra.mrb[24].mxu1 %vm801_vm0, %v1195_v36 }
 0x269   : > { %v1274_v37 = vpop.f32.mrb[0].mxu1 }
 0x26a   : > { %v1275_v38 = vadd.f32 %v1673_v40, %v1274_v37  ;;  %v1798_v39 = vpop.f32.mrb[1].mxu1 }
 0x26b   : > { %v1277_v41 = vpop.f32.mrb[2].mxu1 }
 0x26c   : > { %1329 = vst.msk [vmem:[%s2734_s22] sm:$0xff] %vm1328_vm4, %v1275_v38  ;;  %v1278_v51 = vadd.f32 %v1673_v40, %v1277_v41  ;;  %v1799_v25 = vpop.f32.mrb[3].mxu1 }
 0x26e   : > { %1330 = vst.msk [vmem:[%s2734_s22 + $0x8] sm:$0xff] %vm1328_vm4, %v1278_v51 }
 0x271   : > { %v1282_v44 = vpop.f32.mrb[4].mxu1 }
 0x272   : > { %v1283_v45 = vadd.f32 %v1673_v40, %v1282_v44  ;;  %v1802_v24 = vpop.f32.mrb[5].mxu1 }
 0x273   : > { %v1285_v27 = vpop.f32.mrb[6].mxu1 }
 0x274   : > { %1331 = vst.msk [vmem:[%s2734_s22 + $0x10] sm:$0xff] %vm1328_vm4, %v1283_v45  ;;  %v1286_v48 = vadd.f32 %v1673_v40, %v1285_v27  ;;  %v1803_v23 = vpop.f32.mrb[7].mxu1 }
 0x276   : > { %1332 = vst.msk [vmem:[%s2734_s22 + $0x18] sm:$0xff] %vm1328_vm4, %v1286_v48 }
 0x279   : > { %v1290_v52 = vpop.f32.mrb[8].mxu1 }
 0x27a   : > { %v1291_v46 = vadd.f32 %v1673_v40, %v1290_v52  ;;  %v1806_v47 = vpop.f32.mrb[9].mxu1 }
 0x27b   : > { %v1293_v30 = vpop.f32.mrb[10].mxu1 }
 0x27c   : > { %1333 = vst.msk [vmem:[%s2734_s22 + $0x20] sm:$0xff] %vm1328_vm4, %v1291_v46  ;;  %v1294_v34 = vadd.f32 %v1673_v40, %v1293_v30  ;;  %v1807_v10 = vpop.f32.mrb[11].mxu1 }
 0x27e   : > { %1334 = vst.msk [vmem:[%s2734_s22 + $0x28] sm:$0xff] %vm1328_vm4, %v1294_v34 }
 0x281   : > { %v1298_v16 = vpop.f32.mrb[12].mxu1 }
 0x282   : > { %v1299_v9 = vadd.f32 %v1673_v40, %v1298_v16  ;;  %v1810_v15 = vpop.f32.mrb[13].mxu1 }
 0x283   : > { %v1301_v49 = vpop.f32.mrb[14].mxu1 }
 0x284   : > { %1335 = vst.msk [vmem:[%s2734_s22 + $0x30] sm:$0xff] %vm1328_vm4, %v1299_v9  ;;  %v1302_v42 = vadd.f32 %v1673_v40, %v1301_v49  ;;  %v1811_v43 = vpop.f32.mrb[15].mxu1 }
 0x286   : > { %1336 = vst.msk [vmem:[%s2734_s22 + $0x38] sm:$0xff] %vm1328_vm4, %v1302_v42 }
 0x28a   : > { %v1306_v50 = vpop.f32.mrb[16].mxu1 }
 0x28b   : > { %v1307_v54 = vadd.f32 %v1673_v40, %v1306_v50  ;;  %v1814_v0 = vpop.f32.mrb[17].mxu1 }
 0x28c   : > { %v1309_v55 = vpop.f32.mrb[18].mxu1 }
 0x28d   : > { %1337 = vst.msk [vmem:[%s2734_s22 + $0x40] sm:$0xff] %vm1328_vm4, %v1307_v54  ;;  %v1310_v63 = vadd.f32 %v1673_v40, %v1309_v55  ;;  %v1815_v56 = vpop.f32.mrb[19].mxu1 }
 0x28f   : > { %1338 = vst.msk [vmem:[%s2734_s22 + $0x48] sm:$0xff] %vm1328_vm4, %v1310_v63 }
 0x293   : > { %v1314_v57 = vpop.f32.mrb[20].mxu1 }
 0x294   : > { %v1315_v58 = vadd.f32 %v1673_v40, %v1314_v57  ;;  %v1818_v60 = vpop.f32.mrb[21].mxu1 }
 0x295   : > { %v1317_v2 = vpop.f32.mrb[22].mxu1 }
 0x296   : > { %1339 = vst.msk [vmem:[%s2734_s22 + $0x50] sm:$0xff] %vm1328_vm4, %v1315_v58  ;;  %v1318_v59 = vadd.f32 %v1673_v40, %v1317_v2  ;;  %v1819_v4 = vpop.f32.mrb[23].mxu1 }
 0x298   : > { %1340 = vst.msk [vmem:[%s2734_s22 + $0x58] sm:$0xff] %vm1328_vm4, %v1318_v59  ;;  %1348 = sbr.rel (!%p2311_p4) target bundleno = 732 (0x2dc), region = 52 }
 0x29b   : > { %v1322_v3 = vpop.f32.mrb[24].mxu1 }
 0x29c   : > { %v1323_v5 = vadd.f32 %v1673_v40, %v1322_v3  ;;  %v1822_v6 = vpop.f32.mrb[25].mxu1 }
 0x29d   : > { %v1325_v61 = vpop.f32.mrb[26].mxu1 }
 0x29e   : > { %1341 = vst.msk [vmem:[%s2734_s22 + $0x60] sm:$0xff] %vm1328_vm4, %v1323_v5  ;;  %v1823_v28 = vpop.f32.mrb[27].mxu1 }
 0x29f   : > { %s2867_s24 = smov (!%p1351_p8, %s1350_s24), 13 }
 0x2a0   : > { %s1683_s13 = sshll.u32 %s2867_s24, 7 }
 0x2a1   : > { %p1686_p9 = scmp.eq.s32.totalorder %s1683_s13, 0 }
 0x2a2   : > { %2148 = sdivrem.u32 (!%p1686_p9), %s2867_s24, 13 }
 0x2a3   : > { %1359 = sbr.rel (%p1686_p9) target bundleno = 732 (0x2dc), region = 56 }
 0x2ab   : > { %s2775_s9 = spop.drf %2148 }
 0x2ac   : > { %p1687_p10 = scmp.le.s32.totalorder %s2775_s9, 0 }
 0x2ad   : > { %s2860_s27 = smov (!%p1687_p10), %s2769_s12  ;;  %s2861_s10 = smov (!%p1687_p10), %s2734_s22 }
 0x2ae   : > { %1575 = sbr.rel (%p1687_p10) target bundleno = 703 (0x2bf), region = 138  ;;  %s2784_s21 = smov (!%p1687_p10), 0  }
 0x2af   : > { %s2786_s26 = smov (!%p1687_p10), 0  }
 0x2b5 LB: >> { %v1447_v62 = vld [vmem:[%s2214_s10] sm:$0xff]  ;;  %v1449_v7 = vld [vmem:[%s2214_s10 + $0x8] sm:$0xff]  ;;  %v1451_v29 = vld [vmem:[%s2214_s10 + $0x10] sm:$0xff]  ;;  %s1473_s11 = sadd.s32 1, %s2218_s21  ;;  %s1441_s26 = sadd.s32 1, %s2222_s26   ;;  %s2222_s26 = sphi %s2786_s26, %s1441_s26   ;;  %s2218_s21 = sphi %s2784_s21, %s2862_s21   ;;  %s2214_s10 = sphi %s2861_s10, %s1478_s10   ;;  %s2210_s27 = sphi %s2860_s27, %s1479_s27  }
 0x2b6   : >> { %1448 = vst [vmem:[%s2210_s27] sm:$0xff] %v1447_v62  ;;  %1450 = vst [vmem:[%s2210_s27 + $0x8] sm:$0xff] %v1449_v7  ;;  %v1453_v8 = vld [vmem:[%s2214_s10 + $0x18] sm:$0xff]  ;;  %v1455_v11 = vld [vmem:[%s2214_s10 + $0x20] sm:$0xff]  ;;  %p1474_p11 = scmp.ge.s32.totalorder %s1473_s11, %s2775_s9  ;;  %p1440_p12 = scmp.ge.s32.totalorder %s1441_s26, %s2775_s9 }
 0x2b7   : >> { %1452 = vst [vmem:[%s2210_s27 + $0x10] sm:$0xff] %v1451_v29  ;;  %v1457_v12 = vld [vmem:[%s2214_s10 + $0x28] sm:$0xff]  ;;  %1454 = vst [vmem:[%s2210_s27 + $0x18] sm:$0xff] %v1453_v8  ;;  %v1459_v13 = vld [vmem:[%s2214_s10 + $0x30] sm:$0xff] }
 0x2b8   : >> { %1456 = vst [vmem:[%s2210_s27 + $0x20] sm:$0xff] %v1455_v11  ;;  %1458 = vst [vmem:[%s2210_s27 + $0x28] sm:$0xff] %v1457_v12  ;;  %v1461_v14 = vld [vmem:[%s2214_s10 + $0x38] sm:$0xff]  ;;  %v1463_v17 = vld [vmem:[%s2214_s10 + $0x40] sm:$0xff]  ;;  %s2869_s11 = smov (%p1474_p11, %s1473_s11), 0  ;;  %1443 = sbr.rel (!%p1440_p12) target bundleno = 693 (0x2b5), region = 144 }
 0x2b9   : >> { %1460 = vst [vmem:[%s2210_s27 + $0x30] sm:$0xff] %v1459_v13  ;;  %1462 = vst [vmem:[%s2210_s27 + $0x38] sm:$0xff] %v1461_v14  ;;  %v1465_v18 = vld [vmem:[%s2214_s10 + $0x48] sm:$0xff]  ;;  %v1467_v19 = vld [vmem:[%s2214_s10 + $0x50] sm:$0xff]  ;;  %s1476_s14 = smul.u32 104, %s2869_s11  ;;  %s2862_s21 = smov %s2869_s11 }
 0x2ba   : >> { %1464 = vst [vmem:[%s2210_s27 + $0x40] sm:$0xff] %v1463_v17  ;;  %v1469_v20 = vld [vmem:[%s2214_s10 + $0x58] sm:$0xff]  ;;  %1466 = vst [vmem:[%s2210_s27 + $0x48] sm:$0xff] %v1465_v18  ;;  %v1471_v53 = vld [vmem:[%s2214_s10 + $0x60] sm:$0xff] }
 0x2bb   : >> { %1468 = vst [vmem:[%s2210_s27 + $0x50] sm:$0xff] %v1467_v19  ;;  %1470 = vst [vmem:[%s2210_s27 + $0x58] sm:$0xff] %v1469_v20  ;;  %s1478_s10 = scalar_lea.vmem %s2734_s22, %s1476_s14 [#allocation2]  }
 0x2bc   : >> { %1472 = vst [vmem:[%s2210_s27 + $0x60] sm:$0xff] %v1471_v53  ;;  %s1479_s27 = scalar_lea.vmem %s2769_s12, %s1476_s14  }
 0x2bf PF: > { %2150 = sdivrem.u32 %s2867_s24, 13 }
 0x2c0   : > { %s1688_s15 = smul.u32 104, %s2775_s9 }
 0x2c2   : > { %s1484_s20 = scalar_lea.vmem %s2734_s22, %s1688_s15 [#allocation2]   ;;  %s1486_s16 = scalar_lea.vmem %s2769_s12, %s1688_s15  }
 0x2c8   : > { %s2151_s17 = spop.drf %2150 }
 0x2c9   : > { %p1690_p13 = scmp.le.s32.totalorder %s2151_s17, 0 }
 0x2ca   : > { %s2224_s18 = smov (!%p1690_p13), %s1486_s16   ;;  %s2228_s19 = smov (!%p1690_p13), %s1484_s20  }
 0x2cb   : > { %1589 = sbr.rel (%p1690_p13) target bundleno = 732 (0x2dc), region = 149  ;;  %s2232_s23 = smov (!%p1690_p13), 0  }
 0x2cc   : > { %s2236_s29 = smov (!%p1690_p13), 0  }
 0x2d2 LB: >> { %v1496_v21 = vld [vmem:[%s2230_s19] sm:$0xff]  ;;  %s1498_s30 = sadd.s32 1, %s2234_s23  ;;  %s1490_s29 = sadd.s32 1, %s2238_s29   ;;  %s2238_s29 = sphi %s2236_s29, %s1490_s29   ;;  %s2234_s23 = sphi %s2232_s23, %s2233_s23   ;;  %s2230_s19 = sphi %s2228_s19, %s1503_s19   ;;  %s2226_s18 = sphi %s2224_s18, %s1504_s18  }
 0x2d3   : >> { %1497 = vst [vmem:[%s2226_s18] sm:$0xff] %v1496_v21  ;;  %p1499_p0 = scmp.ge.s32.totalorder %s1498_s30, %s2151_s17  ;;  %p1489_p1 = scmp.ge.s32.totalorder %s1490_s29, %s2151_s17 }
 0x2d5   : >> { %s2871_s30 = smov (%p1499_p0, %s1498_s30), 0  ;;  %1492 = sbr.rel (!%p1489_p1) target bundleno = 722 (0x2d2), region = 155 }
 0x2d6   : >> { %s1691_s22 = sshll.u32 %s2871_s30, 3  ;;  %s2233_s23 = smov %s2871_s30  }
 0x2d7   : >> { %s1503_s19 = scalar_lea.vmem %s1484_s20, %s1691_s22 [#allocation2]   ;;  %s1504_s18 = scalar_lea.vmem %s1486_s16, %s1691_s22  }
 0x2dc PF: > { %p14_p2 = scmp.ge.s32.totalorder %s2301_s28, 4   ;;  %s2863_s24 = smov %s2202_s25 }
 0x2dd   : > { %s2864_s25 = smov %s2309_s8  ;;  %s2865_s26 = smov %s2301_s28 }
 0x2de   :  { %16 = sbr.rel (!%p14_p2) target bundleno = 2 (0x2), region = 166 }

</bundles_post_ra>
